<compile_context>
chip_gen: v7x
topology: tpu7x:2x2x1
jax: 0.10.0
libtpu: 0.0.40
codegen_flags: <defaults>
</compile_context>

<pallas_src>
import jax
import jax.numpy as jnp
from jax.experimental import pallas as pl
from jax.experimental.pallas import tpu as pltpu


_TM_MAX = 2048                    # max rows per tile
_LANE = 128                       # lane width (pad num_labels up to this)
_SUBLANE = 8                      # sublane granularity (M tiles multiple of 8)
_STREAM_VMEM_BUDGET = 32 << 20    # budget for double-buffered streamed tiles
_VMEM_LIMIT_BYTES = 48 << 20      # scoped VMEM limit (headroom under v7x 64MiB)


def _round_up(x, m):
    return ((x + m - 1) // m) * m


def _pick_tm(M, H, L_pad, x_itemsize, out_itemsize):
    """Choose the M-tile size.

    - Fit double-buffered x-in and out tiles inside _STREAM_VMEM_BUDGET.
    - Prefer at least 2 grid steps so the "parallel" M axis can be split
      across v7x's two TensorCores.
    - Keep TM a multiple of 8 sublanes, capped at _TM_MAX.
    """
    bytes_per_row = 2 * (H * x_itemsize + L_pad * out_itemsize)
    tm_budget = max(_SUBLANE,
                    (_STREAM_VMEM_BUDGET // bytes_per_row) // _SUBLANE * _SUBLANE)
    tm_split = max(_SUBLANE, _round_up(pl.cdiv(M, 2), _SUBLANE))
    return max(_SUBLANE, min(_TM_MAX, tm_budget, tm_split))


def _classifier_kernel(x_ref, w_ref, b_ref, o_ref):
    """out = dropout(x) @ W^T + b   (dropout == identity at inference).

    x_ref: [TM, H]       streamed activation tile
    w_ref: [H,  L_pad]   resident (transposed, lane-padded) weight
    b_ref: [1,  L_pad]   resident lane-padded bias
    o_ref: [TM, L_pad]   lane-dense output tile
    """
    x = x_ref[...]                      # dropout(eval) == identity
    w = w_ref[...]
    b = b_ref[...]
    y = jnp.dot(x, w, preferred_element_type=jnp.float32)   # MXU matmul, f32 acc
    o_ref[...] = (y + b).astype(o_ref.dtype)


def roberta_classification(features, weight, bias):
    """features: [B, S, H]
       weight:   [L, H]    (PyTorch nn.Linear layout)
       bias:     [L]
       returns:  [B, S, L]
    """
    B, S, H = features.shape
    L = weight.shape[0]
    M = B * S

    # Lane-dense output: pad the label dim up to a full 128-lane group.
    L_pad = _round_up(L, _LANE)

    # No M padding: ragged last tile handled by Pallas (masked OOB writes).
    x2d = features.reshape(M, H)

    # Weight transpose + lane pad (constant-folded / fused when jitted).
    w_t = weight.T                                        # [H, L]
    if L_pad != L:
        w_t = jnp.pad(w_t, ((0, 0), (0, L_pad - L)))      # [H, L_pad]
        b_p = jnp.pad(bias, (0, L_pad - L))               # [L_pad]
    else:
        b_p = bias
    b2d = b_p.reshape(1, L_pad)

    x_item = jnp.dtype(x2d.dtype).itemsize
    w_item = jnp.dtype(w_t.dtype).itemsize
    out_item = jnp.dtype(features.dtype).itemsize

    TM = _pick_tm(M, H, L_pad, x_item, out_item)
    grid = (pl.cdiv(M, TM),)

    cost = pl.CostEstimate(
        flops=2 * M * H * L_pad,
        transcendentals=0,
        bytes_accessed=M * H * x_item + H * L_pad * w_item + M * L_pad * out_item,
    )

    out = pl.pallas_call(
        _classifier_kernel,
        out_shape=jax.ShapeDtypeStruct((M, L_pad), features.dtype),
        grid=grid,
        in_specs=[
            pl.BlockSpec((TM, H), lambda i: (i, 0)),        # streamed x tiles
            pl.BlockSpec((H, L_pad), lambda i: (0, 0)),     # resident weight
            pl.BlockSpec((1, L_pad), lambda i: (0, 0)),     # resident bias
        ],
        out_specs=pl.BlockSpec((TM, L_pad), lambda i: (i, 0)),
        compiler_params=pltpu.CompilerParams(
            dimension_semantics=("parallel",),              # v7x: 2 TCs split M
            vmem_limit_bytes=_VMEM_LIMIT_BYTES,
        ),
        cost_estimate=cost,
    )(x2d, w_t, b2d)

    # Strip label-lane padding only (no row padding was added).
    return out[:, :L].reshape(B, S, L)


if __name__ == "__main__":
    # Config (small, consistent with the module): hidden_size=32, num_labels=4
    B, S, H, L = 2, 8, 32, 4

    key = jax.random.PRNGKey(0)
    k_feat, k_w, k_b = jax.random.split(key, 3)

    features = jax.random.normal(k_feat, (B, S, H), dtype=jnp.float32)

    # Deterministic nn.Linear-style init: U(-1/sqrt(H), 1/sqrt(H))
    bound = 1.0 / (H ** 0.5)
    weight = jax.random.uniform(k_w, (L, H), jnp.float32, -bound, bound)
    bias = jax.random.uniform(k_b, (L,), jnp.float32, -bound, bound)

    # TODO(synk): training-mode dropout (random mask + 1/(1-p) scaling) not
    # implemented; inference-mode identity used, matching .eval() semantics.
    fn = jax.jit(roberta_classification)   # folds weight transpose / padding
    out = fn(features, weight, bias)
    jax.block_until_ready(out)

    # Quick correctness check against plain JAX reference.
    ref = features.reshape(B * S, H) @ weight.T + bias
    ref = ref.reshape(B, S, L)
    assert out.shape == (B, S, L)
    assert jnp.allclose(out, ref, atol=1e-5, rtol=1e-5)

    print("KERNEL_OK")
</pallas_src>

<mosaic_0001>
module attributes {stable_mosaic.version = 11 : i64} {
  func.func @_classifier_kernel(%arg0: i32, %arg1: memref<8x32xf32, #tpu.memory_space<vmem>>, %arg2: memref<32x128xf32, #tpu.memory_space<vmem>>, %arg3: memref<1x128xf32, #tpu.memory_space<vmem>>, %arg4: memref<8x128xf32, #tpu.memory_space<vmem>>) attributes {dimension_semantics = [#tpu.dimension_semantics<parallel>], iteration_bounds = array<i64: 2>, scalar_prefetch = 0 : i64, scratch_operands = 0 : i64, tpu.core_type = #tpu.core_type<tc>, window_params = [{transform_indices = @transform_0, window_bounds = array<i64: 8, 32>}, {pipeline_mode = #tpu.pipeline_mode<synchronous>, transform_indices = @transform_1, window_bounds = array<i64: 32, 128>}, {pipeline_mode = #tpu.pipeline_mode<synchronous>, transform_indices = @transform_2, window_bounds = array<i64: 1, 128>}, {transform_indices = @transform_3, window_bounds = array<i64: 8, 128>}]} {
    %c0 = arith.constant 0 : index
    %c0_0 = arith.constant 0 : index
    %0 = vector.load %arg1[%c0, %c0_0] : memref<8x32xf32, #tpu.memory_space<vmem>>, vector<8x32xf32>
    %c0_1 = arith.constant 0 : index
    %c0_2 = arith.constant 0 : index
    %1 = vector.load %arg2[%c0_1, %c0_2] : memref<32x128xf32, #tpu.memory_space<vmem>>, vector<32x128xf32>
    %c0_3 = arith.constant 0 : index
    %c0_4 = arith.constant 0 : index
    %2 = vector.load %arg3[%c0_3, %c0_4] : memref<1x128xf32, #tpu.memory_space<vmem>>, vector<1x128xf32>
    %cst = arith.constant dense<0.000000e+00> : vector<8x128xf32>
    %3 = tpu.matmul %0, %1, %cst {dimension_numbers = #tpu.dot_dimension_numbers<[1], [0], [0], [1], [0, 0, 1, 1], [], []>} : vector<8x32xf32>, vector<32x128xf32>, vector<8x128xf32> -> vector<8x128xf32>
    %4 = vector.broadcast %2 : vector<1x128xf32> to vector<8x128xf32>
    %5 = arith.addf %3, %4 : vector<8x128xf32>
    %c0_5 = arith.constant 0 : index
    %c0_6 = arith.constant 0 : index
    %6 = vector.load %arg4[%c0_5, %c0_6] : memref<8x128xf32, #tpu.memory_space<vmem>>, vector<8x128xf32>
    tpu.vector_store %arg4[%c0_5, %c0_6], %5 {strides = array<i32>} : memref<8x128xf32, #tpu.memory_space<vmem>>, vector<8x128xf32>,
    return
  }
  func.func @transform_0(%arg0: i32) -> (i32, i32) {
    %c0_i32 = arith.constant 0 : i32
    %c0_i32_0 = arith.constant 0 : i32
    return %arg0, %c0_i32 : i32, i32
  }
  func.func @transform_1(%arg0: i32) -> (i32, i32) {
    %c0_i32 = arith.constant 0 : i32
    %c0_i32_0 = arith.constant 0 : i32
    %c0_i32_1 = arith.constant 0 : i32
    return %c0_i32, %c0_i32_0 : i32, i32
  }
  func.func @transform_2(%arg0: i32) -> (i32, i32) {
    %c0_i32 = arith.constant 0 : i32
    %c0_i32_0 = arith.constant 0 : i32
    %c0_i32_1 = arith.constant 0 : i32
    return %c0_i32, %c0_i32_0 : i32, i32
  }
  func.func @transform_3(%arg0: i32) -> (i32, i32) {
    %c0_i32 = arith.constant 0 : i32
    %c0_i32_0 = arith.constant 0 : i32
    return %arg0, %c0_i32 : i32, i32
  }
}

</mosaic_0001>

<bundles_post_ra>
// kernel: roberta_classification.1
= control target key start
LH: loop header
LB: loop body
LE: loop exit
PB: predicated region body
PF: predicated region fallthrough
CT: control target
= control target key end

     0   :  { %s381_s12 = smov 0   ;;  %s413_s0 = inlined_call_operand.vmem [shape: f32[16,32], index: 0, kind: input, shape index: {}]   ;;  %s414_s1 = inlined_call_operand.vmem [shape: f32[32,128], index: 1, kind: input, shape index: {}]   ;;  %s415_s2 = inlined_call_operand.vmem [shape: f32[1,128], index: 2, kind: input, shape index: {}]   ;;  %s416_s3 = inlined_call_operand.vmem [shape: f32[16,128], index: 3, kind: output, shape index: {}]  }
   0x1 LB: > { %s306_s13 = sadd.s32 4294967295, %s356_s12   ;;  %p310_p0 = scmp.ge.s32.totalorder %s356_s12, 1  ;;  %s356_s12 = sphi %s381_s12, %s13_s12  }
   0x2   : > { %p136_p1 = scmp.lt.s32.totalorder %s356_s12, 3 }
   0x4   : > { %p137_p2 = pnand %p310_p0, %p136_p1 }
   0x5   : > { %v167_v0 = vld [vmem:[%s414_s1] sm:$0xff] (!%p137_p2)  ;;  %v168_v1 = vld [vmem:[%s414_s1 + $0x8] sm:$0xff] (!%p137_p2)  ;;  %v169_v2 = vld [vmem:[%s414_s1 + $0x10] sm:$0xff] (!%p137_p2)  ;;  %v358_v3 = vmov (!%p137_p2), 0.0|0.0   ;;  %vm359_vm0 = vmmov (!%p137_p2), 0   ;;  %v360_v6 = vmov (!%p137_p2), 0.0  }
   0x6   : > { %140 = sbr.rel (%p137_p2) target bundleno = 232 (0xe8), region = 32  ;;  %333 = vmatprep.subr.bf16.mxu0 (!%p137_p2), %v358_v3  ;;  %v334_v4 = vpack.c.bf16 (!%p137_p2), %v168_v1, %v167_v0  ;;  %v170_v5 = vld [vmem:[%s414_s1 + $0x18] sm:$0xff] (!%p137_p2)  ;;  %330 = vmatprep.mubr.msk.f32.mxu0 (!%p137_p2), %vm359_vm0, %v360_v6  ;;  %p158_p3 = scmp.lt.s32.totalorder (!%p137_p2), %s306_s13, 1  ;;  %vm178_vm1 = vcmask (!%p137_p2), 261120   ;;  %v313_v9 = vld [vmem:[%s415_s2] ss:$0 sm:$0xff] (!%p137_p2) }
   0x7   : > { %v337_v7 = vpack.c.bf16 (!%p137_p2), %v170_v5, %v169_v2 }
   0x8   : > { %335 = vmatpush3.bf16.msra.mxu0 (!%p137_p2), %v334_v4 }
   0x9   : > { %336 = vmatprep.subr.bf16.mxu0 (!%p137_p2), %v358_v3 }
   0xc   : > { %338 = vmatpush3.bf16.msra.mxu0 (!%p137_p2), %v337_v7 }
   0xd   : > { %s418_s13 = smov (!%p158_p3, %s306_s13), 1 }
   0xe   : > { %s311_s22 = sshll.u32 %s418_s13, 3 }
   0xf   : > { %s161_s25 = scalar_lea.vmem %s413_s0, %s311_s22  ;;  %s165_s30 = scalar_lea.vmem %s416_s3, %s311_s22 }
  0x10   : > { %v166_v8 = vld [vmem:[%s161_s25] sm:$0xff] }
  0x11   : > { %331 = vmatmul.mubr.msk.f32.vlgmr.msra.gmra.mrb[0].mxu0 %vm178_vm1, %v166_v8 }
  0xe4   : > { %v248_v10 = vpop.f32.mrb[0].mxu0 }
  0xe5   : > { %v249_v11 = vadd.f32 %v313_v9, %v248_v10  ;;  %v332_v12 = vpop.f32.mrb[1].mxu0 }
  0xe7   : > { %252 = vst [vmem:[%s165_s30] sm:$0xff] %v249_v11 }
  0xe8 PF: > { %s13_s12 = sadd.s32 1, %s356_s12  }
  0xe9   : > { %p10_p4 = scmp.ge.s32.totalorder %s13_s12, 4  }
  0xeb   :  { %12 = sbr.rel (!%p10_p4) target bundleno = 1 (0x1), region = 62 }

</bundles_post_ra>
